<compile_context>
chip_gen: v7x
topology: tpu7x:2x2x1
jax: 0.10.0
libtpu: 0.0.40
codegen_flags: <defaults>
</compile_context>

<pallas_src>
import jax
import jax.numpy as jnp
from jax.experimental import pallas as pl
from jax.experimental.pallas import tpu as pltpu


def _linear_softmax_kernel(x_ref, w_ref, b_ref, o_ref):
    # x_ref: (TM, K)   activation rows (features on lanes)
    # w_ref: (C,  K)   nn.Linear weight, resident across the grid
    # b_ref: (1,  C)   bias (f32), resident across the grid
    # o_ref: (TM, C)   softmax probabilities (PyTorch-facing layout)
    logits = jax.lax.dot_general(
        x_ref[...], w_ref[...],
        dimension_numbers=(((1,), (1,)), ((), ())),   # contract feature axis
        preferred_element_type=jnp.float32,           # MXU, f32 accumulation
    )                                                 # (TM, C)
    logits = logits + b_ref[...]                      # broadcast over rows

    # Numerically stable per-row softmax over the (8-wide) class axis, all f32.
    m = jnp.max(logits, axis=-1, keepdims=True)       # (TM, 1) — XLU reduce, free
    e = jnp.exp(logits - m)                           # EUP
    denom = jnp.sum(e, axis=-1, keepdims=True)        # (TM, 1)
    inv = pl.reciprocal(denom)                        # exact EUP reciprocal
    o_ref[...] = (e * inv).astype(o_ref.dtype)


def _round_up(a, b):
    return (a + b - 1) // b * b


def encode_softmax_forward(senEncode, weight, bias, doc_len=None, *, block_m=2048):
    """senEncode: (..., n_feature); weight: (n_class, n_feature); bias: (n_class,).

    Returns softmax(reshape(senEncode, (-1, n_feature)) @ weight.T + bias), f32,
    shape (M, n_class).
    """
    n_class, n_feature = weight.shape
    s = jnp.reshape(senEncode, (-1, n_feature))       # (M, n_feature) — free reshape
    m = s.shape[0]

    # Row-tile size: multiple of 128, at most block_m; additionally capped so the
    # grid has >= 2 steps when possible (v7x megacore sharding of "parallel").
    tm = min(block_m, _round_up(m, 128))
    if tm > 128 and pl.cdiv(m, tm) < 2:
        tm = max(128, _round_up(pl.cdiv(m, 2), 128))
    grid = (pl.cdiv(m, tm),)                          # last block masked by Pallas

    b2 = bias.astype(jnp.float32).reshape(1, n_class)

    cost = pl.CostEstimate(
        flops=2 * m * n_feature * n_class,
        transcendentals=m * n_class,
        bytes_accessed=(s.size * s.dtype.itemsize
                        + weight.size * weight.dtype.itemsize
                        + b2.size * 4
                        + m * n_class * 4),
    )

    return pl.pallas_call(
        _linear_softmax_kernel,
        out_shape=jax.ShapeDtypeStruct((m, n_class), jnp.float32),
        grid=grid,
        in_specs=[
            pl.BlockSpec((tm, n_feature), lambda i: (i, 0)),        # row tiles
            pl.BlockSpec((n_class, n_feature), lambda i: (0, 0)),   # weight (resident)
            pl.BlockSpec((1, n_class), lambda i: (0, 0)),           # bias   (resident)
        ],
        out_specs=pl.BlockSpec((tm, n_class), lambda i: (i, 0)),    # (M, n_class) directly
        compiler_params=pltpu.CompilerParams(
            dimension_semantics=("parallel",),
        ),
        cost_estimate=cost,
    )(s, weight, b2)


if __name__ == "__main__":
    # Small shapes consistent with the module's forward:
    #   batch=2, seq=8, n_feature=32, n_class=8  ->  M = 16 rows
    batch, seq, n_feature, n_class = 2, 8, 32, 8

    key = jax.random.PRNGKey(0)
    k_x, k_w, k_b = jax.random.split(key, 3)

    senEncode = jax.random.normal(k_x, (batch, seq, n_feature), dtype=jnp.float32)
    doc_len = jnp.full((batch,), seq, dtype=jnp.int32)  # unused, mirrors PyTorch signature

    # nn.Linear parameter shapes: W (n_class, n_feature), b (n_class,)
    weight = jax.random.normal(k_w, (n_class, n_feature), dtype=jnp.float32) * 0.1
    bias = jax.random.normal(k_b, (n_class,), dtype=jnp.float32) * 0.1

    pred = encode_softmax_forward(senEncode, weight, bias, doc_len)
    pred = jax.block_until_ready(pred)

    # Pure-JAX reference (f32 end-to-end, matching the kernel's f32 math).
    s = senEncode.reshape(-1, n_feature)
    ref = jax.nn.softmax(s @ weight.T + bias, axis=-1)

    assert pred.shape == (batch * seq, n_class), pred.shape
    max_err = float(jnp.max(jnp.abs(pred - ref)))
    assert jnp.allclose(pred, ref, atol=1e-4, rtol=1e-4), f"max_err={max_err}"

    # Rows are valid probability distributions.
    assert jnp.allclose(jnp.sum(pred, axis=-1), 1.0, atol=1e-5)

    print("KERNEL_OK")
</pallas_src>

<mosaic_0001>
module attributes {stable_mosaic.version = 11 : i64} {
  func.func @_linear_softmax_kernel(%arg0: i32, %arg1: memref<128x32xf32, #tpu.memory_space<vmem>>, %arg2: memref<8x32xf32, #tpu.memory_space<vmem>>, %arg3: memref<1x8xf32, #tpu.memory_space<vmem>>, %arg4: memref<128x8xf32, #tpu.memory_space<vmem>>) attributes {dimension_semantics = [#tpu.dimension_semantics<parallel>], iteration_bounds = array<i64: 1>, scalar_prefetch = 0 : i64, scratch_operands = 0 : i64, tpu.core_type = #tpu.core_type<tc>, window_params = [{transform_indices = @transform_0, window_bounds = array<i64: 128, 32>}, {pipeline_mode = #tpu.pipeline_mode<synchronous>, transform_indices = @transform_1, window_bounds = array<i64: 8, 32>}, {pipeline_mode = #tpu.pipeline_mode<synchronous>, transform_indices = @transform_2, window_bounds = array<i64: 1, 8>}, {transform_indices = @transform_3, window_bounds = array<i64: 128, 8>}]} {
    %c0 = arith.constant 0 : index
    %c0_0 = arith.constant 0 : index
    %0 = vector.load %arg1[%c0, %c0_0] : memref<128x32xf32, #tpu.memory_space<vmem>>, vector<128x32xf32>
    %c0_1 = arith.constant 0 : index
    %c0_2 = arith.constant 0 : index
    %1 = vector.load %arg2[%c0_1, %c0_2] : memref<8x32xf32, #tpu.memory_space<vmem>>, vector<8x32xf32>
    %cst = arith.constant dense<0.000000e+00> : vector<128x8xf32>
    %2 = tpu.matmul %0, %1, %cst {dimension_numbers = #tpu.dot_dimension_numbers<[1], [1], [0], [0], [0, 0, 1, 0], [], []>} : vector<128x32xf32>, vector<8x32xf32>, vector<128x8xf32> -> vector<128x8xf32>
    %c0_3 = arith.constant 0 : index
    %c0_4 = arith.constant 0 : index
    %3 = vector.load %arg3[%c0_3, %c0_4] : memref<1x8xf32, #tpu.memory_space<vmem>>, vector<1x8xf32>
    %4 = vector.broadcast %3 : vector<1x8xf32> to vector<128x8xf32>
    %5 = arith.addf %2, %4 : vector<128x8xf32>
    %cst_5 = arith.constant dense<0xFF800000> : vector<128xf32>
    %6 = vector.multi_reduction <maximumf>, %5, %cst_5 [1] : vector<128x8xf32> to vector<128xf32>
    %7 = vector.shape_cast %6 : vector<128xf32> to vector<128x1xf32>
    %8 = vector.broadcast %7 : vector<128x1xf32> to vector<128x8xf32>
    %9 = arith.subf %5, %8 : vector<128x8xf32>
    %10 = math.exp %9 : vector<128x8xf32>
    %cst_6 = arith.constant dense<0.000000e+00> : vector<128xf32>
    %11 = vector.multi_reduction <add>, %10, %cst_6 [1] : vector<128x8xf32> to vector<128xf32>
    %12 = vector.shape_cast %11 : vector<128xf32> to vector<128x1xf32>
    %13 = tpu.reciprocal %12 : vector<128x1xf32> -> vector<128x1xf32>
    %14 = vector.broadcast %13 : vector<128x1xf32> to vector<128x8xf32>
    %15 = arith.mulf %10, %14 : vector<128x8xf32>
    %c0_7 = arith.constant 0 : index
    %c0_8 = arith.constant 0 : index
    %16 = vector.load %arg4[%c0_7, %c0_8] : memref<128x8xf32, #tpu.memory_space<vmem>>, vector<128x8xf32>
    tpu.vector_store %arg4[%c0_7, %c0_8], %15 {strides = array<i32>} : memref<128x8xf32, #tpu.memory_space<vmem>>, vector<128x8xf32>,
    return
  }
  func.func @transform_0(%arg0: i32) -> (i32, i32) {
    %c0_i32 = arith.constant 0 : i32
    %c0_i32_0 = arith.constant 0 : i32
    return %arg0, %c0_i32 : i32, i32
  }
  func.func @transform_1(%arg0: i32) -> (i32, i32) {
    %c0_i32 = arith.constant 0 : i32
    %c0_i32_0 = arith.constant 0 : i32
    %c0_i32_1 = arith.constant 0 : i32
    return %c0_i32, %c0_i32_0 : i32, i32
  }
  func.func @transform_2(%arg0: i32) -> (i32, i32) {
    %c0_i32 = arith.constant 0 : i32
    %c0_i32_0 = arith.constant 0 : i32
    %c0_i32_1 = arith.constant 0 : i32
    return %c0_i32, %c0_i32_0 : i32, i32
  }
  func.func @transform_3(%arg0: i32) -> (i32, i32) {
    %c0_i32 = arith.constant 0 : i32
    %c0_i32_0 = arith.constant 0 : i32
    return %arg0, %c0_i32 : i32, i32
  }
}

</mosaic_0001>

<bundles_post_ra>
// kernel: tpu_custom_call.1
= control target key start
LH: loop header
LB: loop body
LE: loop exit
PB: predicated region body
PF: predicated region fallthrough
CT: control target
= control target key end

     0   :  { %8 = vsyncpa [#allocation3], 0  ;;  %s862_s0 = inlined_call_operand.hbm [shape: f32[16,32], index: 0, kind: input, shape index: {}]   ;;  %s863_s1 = inlined_call_operand.hbm [shape: f32[8,32], index: 1, kind: input, shape index: {}]   ;;  %s864_s2 = inlined_call_operand.vmem [shape: f32[1,8], index: 2, kind: input, shape index: {}]   ;;  %s865_s3 = inlined_call_operand.vmem [shape: f32[16,8], index: 3, kind: output, shape index: {}]  }
   0x1   :  { %9 = vsyncpa [#allocation5], 0 }
   0x2   :  { %14 = vsyncadd [#allocation3], 1792  ;;  %s679_s12 = smov [#allocation2]   ;;  %s631_s16 = scalar_lea.hbm %s862_s0, 256 }
   0x3   :  { %s15_s13 = sshll.u32 %s679_s12, 4  ;;  %p632_p0 = scmp.ne.s32.totalorder %s862_s0, %s631_s16  ;;  %s16_s13 = int_to_ptr.vmem [resolvable:$true] %s15_s13 }
   0x4   :  { %p635_p1 = scmp.lt.u32.totalorder %s631_s16, %s862_s0 }
   0x6   :  { %p637_p2 = pnand %p635_p1, %p632_p0 }
   0x8   :  { %640 = shalt.err (!%p637_p2)
}
   0x9   :  { %s641_s21 = scalar_lea.vmem %s16_s13, 256  ;;  %s645_s22 = scalar_lea.vmem %s16_s13, 2048 }
   0xa   :  { %p642_p3 = scmp.ne.s32.totalorder %s16_s13, %s641_s21  ;;  %p646_p4 = scmp.lt.s32.totalorder %s16_s13, %s16_s13 }
   0xb   :  { %p647_p5 = scmp.lt.s32.totalorder %s645_s22, %s641_s21 }
   0xd   :  { %p648_p6 = por %p647_p5, %p646_p4 }
   0xf   :  { %p649_p7 = pnand %p648_p6, %p642_p3 }
  0x11   :  { %652 = shalt.err (!%p649_p7)
}
  0x12   :  { %s680_s23 = smov 128   ;;  %s681_s24 = smov 8  }
  0x13   :  { %21 = dma.hbm_to_vmem [thread:$0]  %s862_s0, 256, %s16_s13, [#allocation3], %s680_s23, %s680_s23, %s681_s24  }
  0x14   :  { %s682_s27 = smov [#allocation4]   ;;  %s653_s4 = scalar_lea.hbm %s863_s1, 128 }
  0x15   :  { %s28_s28 = sshll.u32 %s682_s27, 4  ;;  %p654_p8 = scmp.ne.s32.totalorder %s863_s1, %s653_s4  ;;  %s29_s28 = int_to_ptr.vmem [resolvable:$true] %s28_s28 }
  0x16   :  { %p657_p9 = scmp.lt.u32.totalorder %s653_s4, %s863_s1 }
  0x18   :  { %p659_p10 = pnand %p657_p9, %p654_p8 }
  0x1a   :  { %662 = shalt.err (!%p659_p10)
}
  0x1b   :  { %s663_s9 = scalar_lea.vmem %s29_s28, 128  ;;  %p668_p12 = scmp.lt.s32.totalorder %s29_s28, %s29_s28 }
  0x1c   :  { %p664_p11 = scmp.ne.s32.totalorder %s29_s28, %s663_s9  ;;  %p669_p13 = scmp.lt.s32.totalorder %s663_s9, %s663_s9 }
  0x1e   :  { %p670_p0 = por %p669_p13, %p668_p12 }
  0x20   :  { %p671_p1 = pnand %p670_p0, %p664_p11 }
  0x22   :  { %674 = shalt.err (!%p671_p1)
}
  0x23   :  { %31 = dma.hbm_to_vmem [thread:$0]  %s863_s1, 128, %s29_s28, [#allocation5]  }
  0x24   :  { %675 = dma.done.wait [#allocation3], 2048  }
  0x25   :  { %676 = vsyncadd [#allocation3], 4294965248 }
  0x26   :  { %677 = dma.done.wait [#allocation5], 128  }
  0x27   :  { %678 = vsyncadd [#allocation5], 4294967168  ;;  %vm64_vm0 = vcmask 261120   ;;  %v56_v0 = vld [vmem:[#allocation4] sm:$0xff]  ;;  %v41_v3 = vld [vmem:[#allocation2 + $0x8] sm:$0xff]  ;;  %vm261_vm1 = vcmask 64512  }
  0x28   :  { %v40_v1 = vld [vmem:[#allocation2] sm:$0xff]  ;;  %535 = vmatprep.subr.msk.mxu0 %vm64_vm0, %v56_v0  ;;  %561 = vmatprep.subr.msk.mxu1 %vm64_vm0, %v56_v0  ;;  %v49_v4 = vld [vmem:[#allocation2 + $0x48] sm:$0xff]  ;;  %v42_v5 = vld [vmem:[#allocation2 + $0x10] sm:$0xff] }
  0x29   :  { %v48_v2 = vld [vmem:[#allocation2 + $0x40] sm:$0xff]  ;;  %536 = vmatpush3.xpose.msk.msra.mxu0 %vm64_vm0, %v56_v0  ;;  %562 = vmatpush3.xpose.msk.msra.mxu1 %vm64_vm0, %v56_v0  ;;  %v50_v6 = vld [vmem:[#allocation2 + $0x50] sm:$0xff]  ;;  %v43_v7 = vld [vmem:[#allocation2 + $0x18] sm:$0xff] }
  0x2a   :  { %537 = vmatprep.mubr.msk.f32.mxu0 %vm64_vm0, %v40_v1  ;;  %549 = vmatprep.mubr.msk.f32.mxu1 %vm64_vm0, %v48_v2  ;;  %v51_v8 = vld [vmem:[#allocation2 + $0x58] sm:$0xff]  ;;  %v44_v9 = vld [vmem:[#allocation2 + $0x20] sm:$0xff]  ;;  %v45_v11 = vld [vmem:[#allocation2 + $0x28] sm:$0xff] }
  0x2b   :  { %v52_v10 = vld [vmem:[#allocation2 + $0x60] sm:$0xff]  ;;  %v53_v12 = vld [vmem:[#allocation2 + $0x68] sm:$0xff]  ;;  %v46_v13 = vld [vmem:[#allocation2 + $0x30] sm:$0xff] }
  0x2c   :  { %538 = vmatmul.mubr.msk.f32.vlgmr.msra.gmra.mrb[0].mxu0 %vm64_vm0, %v41_v3  ;;  %550 = vmatmul.mubr.msk.f32.vlgmr.msra.gmra.mrb[0].mxu1 %vm64_vm0, %v49_v4  ;;  %v54_v14 = vld [vmem:[#allocation2 + $0x70] sm:$0xff]  ;;  %v47_v15 = vld [vmem:[#allocation2 + $0x38] sm:$0xff] }
  0x2d   :  { %540 = vmatprep.mubr.msk.f32.mxu0 %vm64_vm0, %v42_v5  ;;  %552 = vmatprep.mubr.msk.f32.mxu1 %vm64_vm0, %v50_v6  ;;  %v55_v16 = vld [vmem:[#allocation2 + $0x78] sm:$0xff]  ;;  %v500_v17 = vld [vmem:[%s864_s2] ss:$0 sm:$0xff] }
  0x30   :  { %541 = vmatmul.mubr.msk.f32.gmra.mrb[2].mxu0 %vm64_vm0, %v43_v7  ;;  %553 = vmatmul.mubr.msk.f32.gmra.mrb[2].mxu1 %vm64_vm0, %v51_v8 }
  0x31   :  { %543 = vmatprep.mubr.msk.f32.mxu0 %vm64_vm0, %v44_v9  ;;  %555 = vmatprep.mubr.msk.f32.mxu1 %vm64_vm0, %v52_v10 }
  0x34   :  { %544 = vmatmul.mubr.msk.f32.gmra.mrb[4].mxu0 %vm64_vm0, %v45_v11  ;;  %556 = vmatmul.mubr.msk.f32.gmra.mrb[4].mxu1 %vm64_vm0, %v53_v12 }
  0x35   :  { %546 = vmatprep.mubr.msk.f32.mxu0 %vm64_vm0, %v46_v13  ;;  %558 = vmatprep.mubr.msk.f32.mxu1 %vm64_vm0, %v54_v14 }
  0x38   :  { %547 = vmatmul.mubr.msk.f32.gmra.mrb[6].mxu0 %vm64_vm0, %v47_v15  ;;  %559 = vmatmul.mubr.msk.f32.gmra.mrb[6].mxu1 %vm64_vm0, %v55_v16 }
  0xff   :  { %v539_v18 = vpop.f32.mrb[0].mxu0  ;;  %v551_v19 = vpop.f32.mrb[0].mxu1 }
 0x100   :  { %v750_v20 = vadd.f32 %v539_v18, %v500_v17  ;;  %v752_v21 = vadd.f32 %v551_v19, %v500_v17  ;;  %v182_v22 = vpop.f32.mrb[1].mxu0  ;;  %v222_v23 = vpop.f32.mrb[1].mxu1 }
 0x101   :  { %v754_v24 = vadd.f32 %v500_v17, %v182_v22  ;;  %v764_v33 = vadd.f32 %v500_v17, %v222_v23 }
 0x102   :  { %v289_v25 = vsel %vm261_vm1, %v752_v21, -inf  ;;  %v265_v26 = vsel %vm261_vm1, %v750_v20, -inf }
 0x103   :  { %290 = vmax.xlane.f32.xlu1 %v289_v25  ;;  %266 = vmax.xlane.f32.xlu0 %v265_v26  ;;  %v542_v27 = vpop.f32.mrb[2].mxu0  ;;  %v554_v28 = vpop.f32.mrb[2].mxu1  ;;  %v262_v35 = vsel %vm261_vm1, %v754_v24, -inf  ;;  %v286_v43 = vsel %vm261_vm1, %v764_v33, -inf }
 0x104   :  { %v760_v29 = vadd.f32 %v542_v27, %v500_v17  ;;  %v192_v30 = vpop.f32.mrb[3].mxu0  ;;  %v762_v31 = vadd.f32 %v554_v28, %v500_v17  ;;  %v232_v32 = vpop.f32.mrb[3].mxu1 }
 0x105   :  { %v772_v41 = vadd.f32 %v500_v17, %v192_v30  ;;  %v774_v42 = vadd.f32 %v500_v17, %v232_v32 }
 0x106   :  { %v271_v34 = vsel %vm261_vm1, %v760_v29, -inf  ;;  %v295_v38 = vsel %vm261_vm1, %v762_v31, -inf }
 0x107   :  { %272 = vmax.xlane.f32.xlu1 %v271_v34  ;;  %263 = vmax.xlane.f32.xlu0 %v262_v35  ;;  %v545_v36 = vpop.f32.mrb[4].mxu0  ;;  %v557_v37 = vpop.f32.mrb[4].mxu1  ;;  %v268_v50 = vsel %vm261_vm1, %v772_v41, -inf  ;;  %v292_v51 = vsel %vm261_vm1, %v774_v42, -inf }
 0x108   :  { %v202_v39 = vpop.f32.mrb[5].mxu0  ;;  %v242_v40 = vpop.f32.mrb[5].mxu1  ;;  %v778_v46 = vadd.f32 %v545_v36, %v500_v17  ;;  %v786_v52 = vadd.f32 %v557_v37, %v500_v17 }
 0x109   :  { %v780_v47 = vadd.f32 %v500_v17, %v202_v39  ;;  %v788_v53 = vadd.f32 %v500_v17, %v242_v40 }
 0x10a   :  { %v277_v54 = vsel %vm261_vm1, %v778_v46, -inf  ;;  %v301_v58 = vsel %vm261_vm1, %v786_v52, -inf }
 0x10b   :  { %296 = vmax.xlane.f32.xlu1 %v295_v38  ;;  %287 = vmax.xlane.f32.xlu0 %v286_v43  ;;  %v548_v44 = vpop.f32.mrb[6].mxu0  ;;  %v560_v45 = vpop.f32.mrb[6].mxu1  ;;  %v274_v55 = vsel %vm261_vm1, %v780_v47, -inf  ;;  %v298_v59 = vsel %vm261_vm1, %v788_v53, -inf }
 0x10c   :  { %v212_v48 = vpop.f32.mrb[7].mxu0  ;;  %v252_v49 = vpop.f32.mrb[7].mxu1  ;;  %v794_v56 = vadd.f32 %v548_v44, %v500_v17  ;;  %v802_v60 = vadd.f32 %v560_v45, %v500_v17 }
 0x10d   :  { %v796_v57 = vadd.f32 %v500_v17, %v212_v48  ;;  %v804_v61 = vadd.f32 %v500_v17, %v252_v49 }
 0x10e   :  { %v283_v62 = vsel %vm261_vm1, %v794_v56, -inf  ;;  %v307_v0 = vsel %vm261_vm1, %v802_v60, -inf }
 0x10f   :  { %269 = vmax.xlane.f32.xlu1 %v268_v50  ;;  %293 = vmax.xlane.f32.xlu0 %v292_v51  ;;  %v280_v63 = vsel %vm261_vm1, %v796_v57, -inf  ;;  %v304_v1 = vsel %vm261_vm1, %v804_v61, -inf }
 0x113   :  { %278 = vmax.xlane.f32.xlu1 %v277_v54  ;;  %275 = vmax.xlane.f32.xlu0 %v274_v55 }
 0x117   :  { %302 = vmax.xlane.f32.xlu1 %v301_v58  ;;  %299 = vmax.xlane.f32.xlu0 %v298_v59 }
 0x11b   :  { %284 = vmax.xlane.f32.xlu1 %v283_v62  ;;  %281 = vmax.xlane.f32.xlu0 %v280_v63 }
 0x11f   :  { %308 = vmax.xlane.f32.xlu1 %v307_v0  ;;  %305 = vmax.xlane.f32.xlu0 %v304_v1 }
 0x190   :  { %v291_v2 = vpop.xlane.xlu1 %290  ;;  %v267_v3 = vpop.xlane.xlu0 %266 }
 0x191   :  { %v319_v4 = vsub.f32 %v752_v21, %v291_v2  ;;  %v311_v5 = vsub.f32 %v750_v20, %v267_v3 }
 0x193   :  { %v344_v6 = vmul.f32 1.442695, %v319_v4  ;;  %v328_v7 = vmul.f32 1.442695, %v311_v5 }
 0x194   :  { %v273_v8 = vpop.xlane.xlu1 %272  ;;  %v264_v9 = vpop.xlane.xlu0 %263 }
 0x195   :  { %v313_v10 = vsub.f32 %v760_v29, %v273_v8  ;;  %v310_v11 = vsub.f32 %v754_v24, %v264_v9  ;;  %567 = vpow2.f32 %v328_v7 }
 0x196   :  { %569 = vpow2.f32 %v344_v6 }
 0x197   :  { %v332_v12 = vmul.f32 1.442695, %v313_v10  ;;  %v326_v13 = vmul.f32 1.442695, %v310_v11 }
 0x198   :  { %v297_v14 = vpop.xlane.xlu1 %296  ;;  %v288_v15 = vpop.xlane.xlu0 %287 }
 0x199   :  { %v321_v16 = vsub.f32 %v762_v31, %v297_v14  ;;  %v318_v17 = vsub.f32 %v764_v33, %v288_v15  ;;  %571 = vpow2.f32 %v326_v13 }
 0x19a   :  { %573 = vpow2.f32 %v332_v12 }
 0x19b   :  { %v342_v18 = vmul.f32 1.442695, %v318_v17  ;;  %v348_v19 = vmul.f32 1.442695, %v321_v16 }
 0x19c   :  { %v270_v20 = vpop.xlane.xlu1 %269  ;;  %v294_v21 = vpop.xlane.xlu0 %293 }
 0x19d   :  { %v312_v22 = vsub.f32 %v772_v41, %v270_v20  ;;  %v320_v23 = vsub.f32 %v774_v42, %v294_v21  ;;  %575 = vpow2.f32 %v342_v18 }
 0x19e   :  { %577 = vpow2.f32 %v348_v19 }
 0x19f   :  { %v330_v24 = vmul.f32 1.442695, %v312_v22  ;;  %v822_v25 = vpop.eup %567  ;;  %v346_v26 = vmul.f32 1.442695, %v320_v23 }
 0x1a0   :  { %v279_v27 = vpop.xlane.xlu1 %278  ;;  %v276_v28 = vpop.xlane.xlu0 %275  ;;  %v361_v32 = vsel %vm261_vm1, %v822_v25, 0.0 }
 0x1a1   :  { %v570_v29 = vpop.eup %569  ;;  %579 = vpow2.f32 %v330_v24  ;;  %v315_v30 = vsub.f32 %v778_v46, %v279_v27  ;;  %v314_v31 = vsub.f32 %v780_v47, %v276_v28  ;;  %362 = vadd.xlane.f32.xlu1 %v361_v32 }
 0x1a2   :  { %581 = vpow2.f32 %v346_v26  ;;  %v385_v38 = vsel %vm261_vm1, %v570_v29, 0.0 }
 0x1a3   :  { %v336_v33 = vmul.f32 1.442695, %v315_v30  ;;  %v828_v34 = vpop.eup %571  ;;  %v334_v35 = vmul.f32 1.442695, %v314_v31 }
 0x1a4   :  { %v303_v36 = vpop.xlane.xlu1 %302  ;;  %v300_v37 = vpop.xlane.xlu0 %299  ;;  %v358_v42 = vsel %vm261_vm1, %v828_v34, 0.0 }
 0x1a5   :  { %v574_v39 = vpop.eup %573  ;;  %583 = vpow2.f32 %v336_v33  ;;  %v323_v40 = vsub.f32 %v786_v52, %v303_v36  ;;  %v322_v41 = vsub.f32 %v788_v53, %v300_v37  ;;  %386 = vadd.xlane.f32.xlu1 %v385_v38  ;;  %359 = vadd.xlane.f32.xlu0 %v358_v42 }
 0x1a6   :  { %585 = vpow2.f32 %v334_v35  ;;  %v367_v48 = vsel %vm261_vm1, %v574_v39, 0.0 }
 0x1a7   :  { %v352_v43 = vmul.f32 1.442695, %v323_v40  ;;  %v576_v44 = vpop.eup %575  ;;  %v350_v45 = vmul.f32 1.442695, %v322_v41 }
 0x1a8   :  { %v285_v46 = vpop.xlane.xlu1 %284  ;;  %v282_v47 = vpop.xlane.xlu0 %281  ;;  %v382_v51 = vsel %vm261_vm1, %v576_v44, 0.0 }
 0x1a9   :  { %587 = vpow2.f32 %v352_v43  ;;  %v317_v49 = vsub.f32 %v794_v56, %v285_v46  ;;  %v316_v50 = vsub.f32 %v796_v57, %v282_v47  ;;  %v578_v52 = vpop.eup %577  ;;  %368 = vadd.xlane.f32.xlu1 %v367_v48  ;;  %383 = vadd.xlane.f32.xlu0 %v382_v51 }
 0x1aa   :  { %589 = vpow2.f32 %v350_v45  ;;  %v391_v57 = vsel %vm261_vm1, %v578_v52, 0.0 }
 0x1ab   :  { %v580_v53 = vpop.eup %579  ;;  %v340_v54 = vmul.f32 1.442695, %v317_v49  ;;  %v338_v55 = vmul.f32 1.442695, %v316_v50 }
 0x1ac   :  { %v309_v58 = vpop.xlane.xlu1 %308  ;;  %v306_v59 = vpop.xlane.xlu0 %305  ;;  %v364_v62 = vsel %vm261_vm1, %v580_v53, 0.0 }
 0x1ad   :  { %591 = vpow2.f32 %v340_v54  ;;  %v325_v63 = vsub.f32 %v802_v60, %v309_v58  ;;  %v324_v56 = vsub.f32 %v804_v61, %v306_v59  ;;  %v582_v0 = vpop.eup %581  ;;  %392 = vadd.xlane.f32.xlu1 %v391_v57  ;;  %365 = vadd.xlane.f32.xlu0 %v364_v62 }
 0x1ae   :  { %593 = vpow2.f32 %v338_v55  ;;  %v388_v5 = vsel %vm261_vm1, %v582_v0, 0.0 }
 0x1af   :  { %v584_v1 = vpop.eup %583  ;;  %v356_v2 = vmul.f32 1.442695, %v325_v63  ;;  %v354_v3 = vmul.f32 1.442695, %v324_v56 }
 0x1b0   :  { %v373_v4 = vsel %vm261_vm1, %v584_v1, 0.0  ;;  %v586_v6 = vpop.eup %585 }
 0x1b1   :  { %595 = vpow2.f32 %v356_v2  ;;  %374 = vadd.xlane.f32.xlu1 %v373_v4  ;;  %389 = vadd.xlane.f32.xlu0 %v388_v5  ;;  %v370_v7 = vsel %vm261_vm1, %v586_v6, 0.0 }
 0x1b2   :  { %597 = vpow2.f32 %v354_v3 }
 0x1b3   :  { %v588_v60 = vpop.eup %587 }
 0x1b4   :  { %v397_v61 = vsel %vm261_vm1, %v588_v60, 0.0  ;;  %v590_v8 = vpop.eup %589 }
 0x1b5   :  { %398 = vadd.xlane.f32.xlu1 %v397_v61  ;;  %371 = vadd.xlane.f32.xlu0 %v370_v7  ;;  %v394_v11 = vsel %vm261_vm1, %v590_v8, 0.0 }
 0x1b7   :  { %v592_v9 = vpop.eup %591 }
 0x1b8   :  { %v379_v10 = vsel %vm261_vm1, %v592_v9, 0.0  ;;  %v594_v12 = vpop.eup %593 }
 0x1b9   :  { %380 = vadd.xlane.f32.xlu1 %v379_v10  ;;  %395 = vadd.xlane.f32.xlu0 %v394_v11  ;;  %v376_v15 = vsel %vm261_vm1, %v594_v12, 0.0 }
 0x1bb   :  { %v596_v13 = vpop.eup %595 }
 0x1bc   :  { %v403_v14 = vsel %vm261_vm1, %v596_v13, 0.0  ;;  %v598_v16 = vpop.eup %597 }
 0x1bd   :  { %404 = vadd.xlane.f32.xlu1 %v403_v14  ;;  %377 = vadd.xlane.f32.xlu0 %v376_v15  ;;  %v400_v17 = vsel %vm261_vm1, %v598_v16, 0.0 }
 0x1c1   :  { %401 = vadd.xlane.f32.xlu0 %v400_v17 }
 0x22e   :  { %v363_v18 = vpop.xlane.xlu1 %362 }
 0x22f   :  { %599 = vrcp.f32 %v363_v18 }
 0x232   :  { %v387_v19 = vpop.xlane.xlu1 %386  ;;  %v360_v20 = vpop.xlane.xlu0 %359 }
 0x233   :  { %601 = vrcp.f32 %v387_v19 }
 0x234   :  { %603 = vrcp.f32 %v360_v20 }
 0x236   :  { %v369_v21 = vpop.xlane.xlu1 %368  ;;  %v384_v22 = vpop.xlane.xlu0 %383 }
 0x237   :  { %605 = vrcp.f32 %v369_v21 }
 0x238   :  { %607 = vrcp.f32 %v384_v22 }
 0x239   :  { %v600_v23 = vpop.eup %599 }
 0x23a   :  { %v423_v24 = vmul.f32 %v600_v23, %v822_v25  ;;  %v393_v26 = vpop.xlane.xlu1 %392  ;;  %v366_v27 = vpop.xlane.xlu0 %365 }
 0x23b   :  { %609 = vrcp.f32 %v393_v26 }
 0x23c   :  { %439 = vst.msk [vmem:[#allocation6 + $0x8] sm:$0xff] %vm261_vm1, %v423_v24  ;;  %611 = vrcp.f32 %v366_v27 }
 0x23d   :  { %v602_v28 = vpop.eup %601 }
 0x23e   :  { %v604_v29 = vpop.eup %603  ;;  %v375_v30 = vpop.xlane.xlu1 %374 }
 0x23f   :  { %v390_v31 = vpop.xlane.xlu0 %389  ;;  %v422_v32 = vmul.f32 %v604_v29, %v828_v34  ;;  %613 = vrcp.f32 %v375_v30 }
 0x240   :  { %615 = vrcp.f32 %v390_v31 }
 0x241   :  { %v606_v33 = vpop.eup %605  ;;  %438 = vst.msk [vmem:[#allocation6] sm:$0xff] %vm261_vm1, %v422_v32 }
 0x242   :  { %v608_v35 = vpop.eup %607  ;;  %v399_v36 = vpop.xlane.xlu1 %398 }
 0x243   :  { %v372_v25 = vpop.xlane.xlu0 %371  ;;  %v487_v37 = vld [vmem:[#allocation6 + $0x8] sm:$0xff]  ;;  %617 = vrcp.f32 %v399_v36 }
 0x244   :  { %488 = vst [vmem:[%s865_s3 + $0x8] sm:$0xff] %v487_v37  ;;  %619 = vrcp.f32 %v372_v25 }
 0x245   :  { %v610_v38 = vpop.eup %609 }
 0x246   :  { %v612_v39 = vpop.eup %611  ;;  %v381_v40 = vpop.xlane.xlu1 %380 }
 0x247   :  { %v396_v41 = vpop.xlane.xlu0 %395  ;;  %621 = vrcp.f32 %v381_v40 }
 0x248   :  { %v485_v34 = vld [vmem:[#allocation6] sm:$0xff]  ;;  %623 = vrcp.f32 %v396_v41 }
 0x249   :  { %v614_v42 = vpop.eup %613  ;;  %486 = vst [vmem:[%s865_s3] sm:$0xff] %v485_v34 }
 0x24a   :  { %v616_v43 = vpop.eup %615  ;;  %v405_v44 = vpop.xlane.xlu1 %404 }
 0x24b   :  { %v378_v45 = vpop.xlane.xlu0 %377  ;;  %625 = vrcp.f32 %v405_v44 }
 0x24c   :  { %627 = vrcp.f32 %v378_v45 }
 0x24d   :  { %v618_v46 = vpop.eup %617 }
 0x24e   :  { %v620_v47 = vpop.eup %619 }
 0x24f   :  { %v402_v48 = vpop.xlane.xlu0 %401 }
 0x250   :  { %629 = vrcp.f32 %v402_v48 }
 0x251   :  { %v622_v49 = vpop.eup %621 }
 0x252   :  { %v624_v50 = vpop.eup %623 }
 0x255   :  { %v626_v51 = vpop.eup %625 }
 0x256   :  { %v628_v52 = vpop.eup %627 }
 0x25a   :  { %v630_v53 = vpop.eup %629 }
 0x25b   :  { %494 = vsyncpa [#allocation3], 1 }
 0x25c   :  { %495 = vsyncpa [#allocation5], 1 }

</bundles_post_ra>
